<compile_context>
chip_gen: v7x
topology: tpu7x:2x2x1
jax: 0.10.0
libtpu: 0.0.40
codegen_flags: <defaults>
</compile_context>

<pallas_src>
import functools
import math

import numpy as np
import jax
import jax.numpy as jnp
from jax.experimental import pallas as pl
from jax.experimental.pallas import tpu as pltpu


def _round_up(x, m):
    return ((x + m - 1) // m) * m


def _cbn_kernel(x_ref, out_ref, *, tb, c, inv_hw):
    # x_ref:   (TB*C, HW) float32 block -- TB images, channels packed densely
    #                                      along sublanes (no round_up(C,8) pad)
    # out_ref: (1, TB)    int32   block -- lane-dense per-image argmax
    y = jnp.tanh(x_ref[...] * 0.05 - 1.0)                 # VPU mul/sub + EUP tanh
    sums = jnp.sum(y, axis=-1)                            # (TB*C,) lane reduce (XLU)
    means = sums.reshape(tb, c) * inv_hw                  # tiny (TB, C) array
    mx = jnp.max(means, axis=-1, keepdims=True)           # (TB, 1)
    ids = jax.lax.broadcasted_iota(jnp.int32, means.shape, 1)
    # First-occurrence argmax (matches torch.argmax tie-breaking).
    pred = jnp.min(jnp.where(means == mx, ids, jnp.int32(c)), axis=-1)  # (TB,)
    out_ref[...] = pred[None, :]


def cbn_pooling_forward(x, *, vmem_budget_bytes=12 * 1024 * 1024,
                        min_grid_steps=2):
    """CBNPooling forward:  argmax_c mean_{h,w} tanh(0.05*x - 1).

    x: [B, C, H, W] float32 (NCHW).  Returns [B] int32 class predictions.
    """
    B, C, H, W = x.shape
    HW = H * W
    HW_pad = _round_up(HW, 128)            # lane padding of one block row in VMEM

    # TB granularity so that TB*C is a multiple of 8 (dense sublane packing).
    g = 8 // math.gcd(C, 8)

    # Largest TB (multiple of g) whose double-buffered input block fits the
    # budget.  The conservative default budget stays inside every generation's
    # scoped-VMEM default (16 MiB v5e, 32 MiB v6e/v7x) without vmem_limit_bytes.
    img_bytes = C * HW_pad * 4
    tb_cap = max(1, vmem_budget_bytes // (2 * img_bytes))
    TB = max(g, (tb_cap // g) * g)
    # No point tiling wider than the (granularity-rounded) batch.
    TB = min(TB, _round_up(B, g))
    # Prefer >= min_grid_steps grid steps when the batch allows, so the
    # "parallel" batch axis can shard across v7x's two TensorCores.
    if B >= min_grid_steps * g:
        TB = min(TB, max(g, _round_up(pl.cdiv(B, min_grid_steps), g)))
    nb = pl.cdiv(B, TB)
    # TODO(synk): if a single image (C * HW_pad * 4 bytes) ever exceeds the
    # VMEM budget, add an inner grid axis over HW with a sum accumulator.

    # Contiguous-dim collapse only: no relayout, no extra HBM pass, no padding.
    x_rows = x.reshape(B * C, HW)

    kernel = functools.partial(_cbn_kernel, tb=TB, c=C, inv_hw=1.0 / float(HW))

    out = pl.pallas_call(
        kernel,
        out_shape=jax.ShapeDtypeStruct((nb, TB), jnp.int32),
        grid_spec=pltpu.PrefetchScalarGridSpec(
            num_scalar_prefetch=0,
            grid=(nb,),
            in_specs=[
                # Ragged final block (B % TB != 0) is handled by Pallas; its
                # garbage rows only feed predictions >= B, sliced off below.
                pl.BlockSpec((TB * C, HW), lambda b: (b, 0)),
            ],
            out_specs=pl.BlockSpec((1, TB), lambda b: (b, 0)),
        ),
        compiler_params=pltpu.CompilerParams(
            dimension_semantics=("parallel",)),
    )(x_rows)

    return out.reshape(-1)[:B]


def _reference_forward(x):
    """Plain-JAX reference mirroring the PyTorch CBNPooling.forward."""
    y = jnp.tanh(x * 0.05 - 1.0)
    m = jnp.mean(y, axis=(2, 3))
    return jnp.argmax(m, axis=1).astype(jnp.int32)


if __name__ == "__main__":
    key = jax.random.PRNGKey(0)

    # Small shapes consistent with the module: batch=2, channels=4, 16x16.
    B, C, H, W = 2, 4, 16, 16
    x = jax.random.normal(key, (B, C, H, W), dtype=jnp.float32)

    out = jax.block_until_ready(cbn_pooling_forward(x))
    ref = _reference_forward(x)
    np.testing.assert_array_equal(np.asarray(out), np.asarray(ref))

    # Multi-step grid path (nb >= 2, batch divides the tile).
    x2 = jax.random.normal(jax.random.PRNGKey(1), (16, C, H, W), jnp.float32)
    np.testing.assert_array_equal(
        np.asarray(jax.block_until_ready(cbn_pooling_forward(x2))),
        np.asarray(_reference_forward(x2)))

    # Ragged final block path (B % TB != 0) -- padded predictions sliced off.
    x3 = jax.random.normal(jax.random.PRNGKey(2), (5, C, H, W), jnp.float32)
    np.testing.assert_array_equal(
        np.asarray(jax.block_until_ready(cbn_pooling_forward(x3))),
        np.asarray(_reference_forward(x3)))

    print("KERNEL_OK")
</pallas_src>

<mosaic_0001>
module attributes {stable_mosaic.version = 11 : i64} {
  func.func @_cbn_kernel(%arg0: i32, %arg1: memref<8x256xf32, #tpu.memory_space<vmem>>, %arg2: memref<1x2xi32, #tpu.memory_space<vmem>>) attributes {dimension_semantics = [#tpu.dimension_semantics<parallel>], iteration_bounds = array<i64: 1>, scalar_prefetch = 0 : i64, scratch_operands = 0 : i64, tpu.core_type = #tpu.core_type<tc>, window_params = [{transform_indices = @transform_0, window_bounds = array<i64: 8, 256>}, {transform_indices = @transform_1, window_bounds = array<i64: 1, 2>}]} {
    %c0 = arith.constant 0 : index
    %c0_0 = arith.constant 0 : index
    %0 = vector.load %arg1[%c0, %c0_0] : memref<8x256xf32, #tpu.memory_space<vmem>>, vector<8x256xf32>
    %cst = arith.constant 5.000000e-02 : f32
    %1 = vector.broadcast %cst : f32 to vector<8x256xf32>
    %2 = arith.mulf %0, %1 : vector<8x256xf32>
    %cst_1 = arith.constant 1.000000e+00 : f32
    %3 = vector.broadcast %cst_1 : f32 to vector<8x256xf32>
    %4 = arith.subf %2, %3 : vector<8x256xf32>
    %5 = math.tanh %4 : vector<8x256xf32>
    %cst_2 = arith.constant dense<0.000000e+00> : vector<8xf32>
    %6 = vector.multi_reduction <add>, %5, %cst_2 [1] : vector<8x256xf32> to vector<8xf32>
    %7 = vector.shape_cast %6 : vector<8xf32> to vector<2x4xf32>
    %cst_3 = arith.constant 3.906250e-03 : f32
    %8 = vector.broadcast %cst_3 : f32 to vector<2x4xf32>
    %9 = arith.mulf %7, %8 : vector<2x4xf32>
    %cst_4 = arith.constant dense<0xFF800000> : vector<2xf32>
    %10 = vector.multi_reduction <maximumf>, %9, %cst_4 [1] : vector<2x4xf32> to vector<2xf32>
    %11 = vector.shape_cast %10 : vector<2xf32> to vector<2x1xf32>
    %12 = tpu.iota {dimensions = array<i32: 1>} : vector<2x4xi32>
    %13 = vector.broadcast %11 : vector<2x1xf32> to vector<2x4xf32>
    %14 = arith.cmpf oeq, %9, %13 : vector<2x4xf32>
    %c4_i32 = arith.constant 4 : i32
    %15 = vector.broadcast %c4_i32 : i32 to vector<2x4xi32>
    %16 = arith.select %14, %12, %15 : vector<2x4xi1>, vector<2x4xi32>
    %cst_5 = arith.constant dense<2147483647> : vector<2xi32>
    %17 = vector.multi_reduction <minsi>, %16, %cst_5 [1] : vector<2x4xi32> to vector<2xi32>
    %18 = vector.shape_cast %17 : vector<2xi32> to vector<1x2xi32>
    %c0_6 = arith.constant 0 : index
    %c0_7 = arith.constant 0 : index
    %19 = vector.load %arg2[%c0_6, %c0_7] : memref<1x2xi32, #tpu.memory_space<vmem>>, vector<1x2xi32>
    tpu.vector_store %arg2[%c0_6, %c0_7], %18 {strides = array<i32>} : memref<1x2xi32, #tpu.memory_space<vmem>>, vector<1x2xi32>,
    return
  }
  func.func @transform_0(%arg0: i32) -> (i32, i32) {
    %c0_i32 = arith.constant 0 : i32
    %c0_i32_0 = arith.constant 0 : i32
    return %arg0, %c0_i32 : i32, i32
  }
  func.func @transform_1(%arg0: i32) -> (i32, i32) {
    %c0_i32 = arith.constant 0 : i32
    %c0_i32_0 = arith.constant 0 : i32
    return %arg0, %c0_i32 : i32, i32
  }
}

</mosaic_0001>

<bundles_post_ra>
// kernel: tpu_custom_call.1
= control target key start
LH: loop header
LB: loop body
LE: loop exit
PB: predicated region body
PF: predicated region fallthrough
CT: control target
= control target key end

     0   :  { %6 = vsyncpa [#allocation3], 0  ;;  %s273_s0 = inlined_call_operand.hbm [shape: f32[8,256], index: 0, kind: input, shape index: {}]   ;;  %s274_s1 = inlined_call_operand.hbm [shape: s32[1,2], index: 1, kind: output, shape index: {}]  }
   0x1   :  { %7 = vsyncpa [#allocation4], 0  ;;  %s230_s6 = smov [#allocation2]   ;;  %s182_s10 = scalar_lea.hbm %s273_s0, 256 }
   0x2   :  { %s14_s7 = sshll.u32 %s230_s6, 4  ;;  %p183_p0 = scmp.ne.s32.totalorder %s273_s0, %s182_s10  ;;  %s15_s7 = int_to_ptr.vmem [resolvable:$true] %s14_s7 }
   0x3   :  { %p186_p1 = scmp.lt.u32.totalorder %s182_s10, %s273_s0 }
   0x5   :  { %p188_p2 = pnand %p186_p1, %p183_p0 }
   0x7   :  { %191 = shalt.err (!%p188_p2)
}
   0x8   :  { %s192_s15 = scalar_lea.vmem %s15_s7, 256  ;;  %p197_p4 = scmp.lt.s32.totalorder %s15_s7, %s15_s7 }
   0x9   :  { %p193_p3 = scmp.ne.s32.totalorder %s15_s7, %s192_s15  ;;  %p198_p5 = scmp.lt.s32.totalorder %s192_s15, %s192_s15 }
   0xb   :  { %p199_p6 = por %p198_p5, %p197_p4 }
   0xd   :  { %p200_p7 = pnand %p199_p6, %p193_p3 }
   0xf   :  { %203 = shalt.err (!%p200_p7)
}
  0x10   :  { %17 = dma.hbm_to_vmem [thread:$0]  %s273_s0, 256, %s15_s7, [#allocation3]  }
  0x11   :  { %226 = dma.done.wait [#allocation3], 256  }
  0x12   :  { %227 = vsyncadd [#allocation3], 4294967040  ;;  %v21_v0 = vld [vmem:[#allocation2] sm:$0xff]  ;;  %v22_v1 = vld [vmem:[#allocation2 + $0x8] sm:$0xff]  ;;  %v231_v9 = vmov 0   ;;  %v36_v12 = vlaneseq  ;;  %vm69_vm0 = vcmask 1041409  }
  0x13   :  { %v23_v2 = vmul.f32 0.05, %v21_v0  ;;  %v24_v3 = vmul.f32 0.05, %v22_v1  ;;  %177 = vset.pattern.permute.xlu1 %v231_v9  ;;  %176 = vset.pattern.permute.xlu0 %v231_v9  ;;  %v232_v10 = vmov 839922192  }
  0x14   :  { %v34_v11 = vunpack.c.l.s4 %v232_v10  ;;  %v233_v13 = vmov 1985246804   ;;  %v37_v16 = vshrl.u32 %v36_v12, 7  ;;  %v60_v25 = vand.u32 127, %v36_v12  ;;  %s234_s0 = smov [#allocation5]  }
  0x15   :  { %v169_v4 = vadd.f32 -1.0, %v23_v2  ;;  %v170_v5 = vadd.f32 -1.0, %v24_v3  ;;  %v41_v14 = vunpack.c.l.s4 %v233_v13  ;;  %vm72_vm1 = vcmask 25600   ;;  %s160_s18 = sshll.u32 %s234_s0, 4  ;;  %s161_s18 = int_to_ptr.vmem [resolvable:$true] %s160_s18 }
  0x16   :  { %v35_v15 = vunpack.c.0.s8 %v34_v11  ;;  %v63_v26 = vsub.s32 %v60_v25, %v37_v16  ;;  %v86_v33 = vsub.s32 0, %v37_v16  ;;  %v93_v35 = vsub.s32 1, %v37_v16  ;;  %s204_s19 = scalar_lea.vmem %s161_s18, 16  ;;  %s208_s20 = scalar_lea.vmem %s161_s18, 32 }
  0x17   :  { %178 = vtanh.f32 %v169_v4  ;;  %v42_v17 = vunpack.c.0.s8 %v41_v14  ;;  %vm152_vm5 = vcmask 8192   ;;  %p205_p8 = scmp.ne.s32.totalorder %s161_s18, %s204_s19  ;;  %p209_p9 = scmp.lt.s32.totalorder %s161_s18, %s161_s18 }
  0x18   :  { %180 = vtanh.f32 %v170_v5  ;;  %v38_v18 = vsub.s32 %v35_v15, %v37_v16  ;;  %v105_v34 = vrot.slane %v60_v25, %v86_v33  ;;  %v112_v40 = vrot.slane %v60_v25, %v93_v35  ;;  %p210_p10 = scmp.lt.s32.totalorder %s208_s20, %s204_s19 }
  0x19   :  { %v45_v19 = vsub.s32 %v42_v17, %v37_v16 }
  0x1a   :  { %p211_p11 = por %p210_p10, %p209_p9 }
  0x1c   :  { %p212_p12 = pnand %p211_p11, %p205_p8 }
  0x21   :  { %v179_v6 = vpop.eup %178 }
  0x22   :  { %v181_v7 = vpop.eup %180 }
  0x23   :  { %v29_v8 = vadd.f32 %v181_v7, %v179_v6 }
  0x25   :  { %30 = vadd.xlane.f32.xlu0 %v29_v8 }
  0xb2   :  { %v31_v20 = vpop.xlane.xlu0 %30 }
  0xb3   :  { %v39_v21 = vrot.slane %v31_v20, %v38_v18  ;;  %v46_v22 = vrot.slane %v31_v20, %v45_v19 }
  0xb5   :  { %v49_v23 = vmul.f32 0.00390625, %v39_v21  ;;  %v50_v24 = vmul.f32 0.00390625, %v46_v22 }
  0xb7   :  { %57 = vperm.xlu1 %177, %v50_v24   ;;  %54 = vperm.xlu0 %176, %v49_v23  }
  0xbb   :  { %107 = vbcast.lane.b32.xlu0 %v105_v34, 256 }
 0x136   :  { %v58_v27 = vpop.permute.xlu1 %57  ;;  %v55_v28 = vpop.permute.xlu0 %54 }
 0x137   :  { %v68_v29 = vrot.slane %v58_v27, %v63_v26  ;;  %v64_v30 = vrot.slane %v55_v28, %v63_v26 }
 0x139   :  { %v70_v31 = vsel %vm69_vm0, %v68_v29, %v64_v30 }
 0x13a   :  { %v73_v32 = vsel %vm72_vm1, %v70_v31, -inf  ;;  %v108_v41 = vpop.permute.xlu0 %107 }
 0x13b   :  { %74 = vmax.xlane.f32.xlu1 %v73_v32 }
 0x1c8   :  { %v75_v36 = vpop.xlane.xlu1 %74 }
 0x1c9   :  { %v83_v37 = vrot.slane %v75_v36, %v38_v18 }
 0x1cb   :  { %v94_v38 = vrot.slane %v83_v37, %v93_v35  ;;  %v87_v39 = vrot.slane %v83_v37, %v86_v33 }
 0x1cd   :  { %96 = vbcast.lane.b32.xlu0 %v94_v38, 256  ;;  %89 = vbcast.lane.b32.xlu1 %v87_v39, 256 }
 0x1d1   :  { %114 = vbcast.lane.b32.xlu0 %v112_v40, 256 }
 0x23f   :  { %v90_v42 = vpop.permute.xlu1 %89  ;;  %v97_v43 = vpop.permute.xlu0 %96 }
 0x240   :  { %vm100_vm2 = vcmp.eq.f32.partialorder %v49_v23, %v90_v42  ;;  %vm101_vm3 = vcmp.eq.f32.partialorder %v50_v24, %v97_v43 }
 0x241   :  { %v116_v44 = vsel %vm100_vm2, %v108_v41, 4 }
 0x242   :  { %119 = vperm.xlu1 %177, %v116_v44  }
 0x243   :  { %v115_v45 = vpop.permute.xlu0 %114 }
 0x244   :  { %v117_v46 = vsel %vm101_vm3, %v115_v45, 4 }
 0x245   :  { %122 = vperm.xlu0 %176, %v117_v46  }
 0x2c1   :  { %v120_v47 = vpop.permute.xlu1 %119 }
 0x2c2   :  { %v127_v49 = vrot.slane %v120_v47, %v63_v26 }
 0x2c4   :  { %v123_v48 = vpop.permute.xlu0 %122 }
 0x2c5   :  { %v131_v50 = vrot.slane %v123_v48, %v63_v26 }
 0x2c7   :  { %v132_v51 = vsel %vm69_vm0, %v131_v50, %v127_v49 }
 0x2c8   :  { %v133_v52 = vsel %vm72_vm1, %v132_v51, 2147483647 }
 0x2c9   :  { %v135_v53 = vshra.s32 %v133_v52, 16  ;;  %v134_v55 = vand.u32 65535, %v133_v52 }
 0x2cb   :  { %v137_v54 = vcvt.s32.f32 %v135_v53  ;;  %v136_v57 = vcvt.s32.f32 %v134_v55 }
 0x2cd   :  { %138 = vmin.xlane.f32.xlu1 %v137_v54 }
 0x35a   :  { %v139_v56 = vpop.xlane.xlu1 %138 }
 0x35b   :  { %vm140_vm4 = vcmp.eq.f32.partialorder %v137_v54, %v139_v56  ;;  %v145_v59 = vcvt.f32.s32 %v139_v56 }
 0x35c   :  { %v141_v58 = vsel %vm140_vm4, %v136_v57, inf }
 0x35d   :  { %142 = vmin.xlane.f32.xlu0 %v141_v58  ;;  %v146_v61 = vshll.u32 %v145_v59, 16 }
 0x3ea   :  { %v143_v60 = vpop.xlane.xlu0 %142 }
 0x3eb   :  { %v144_v62 = vcvt.f32.s32 %v143_v60 }
 0x3ed   :  { %v147_v63 = vadd.s32 %v146_v61, %v144_v62 }
 0x3ef   :  { %v151_v0 = vrot.slane %v147_v63, %v63_v26 }
 0x3f1   :  { %153 = vst.msk [vmem:[#allocation5] sm:$0x1] %vm152_vm5, %v151_v0 }
 0x3f2   :  { %215 = shalt.err (!%p212_p12)
}
 0x3f3   :  { %s216_s23 = scalar_lea.hbm %s274_s1, 16 }
 0x3f4   :  { %p217_p13 = scmp.ne.s32.totalorder %s274_s1, %s216_s23  ;;  %p220_p0 = scmp.lt.u32.totalorder %s216_s23, %s274_s1 }
 0x3f6   :  { %p222_p1 = pnand %p220_p0, %p217_p13 }
 0x3f8   :  { %225 = shalt.err (!%p222_p1)
}
 0x3f9   :  { %163 = dma.vmem_to_hbm [thread:$0]  %s161_s18, 16, %s274_s1, [#allocation4]  }
 0x3fa   :  { %228 = dma.done.wait [#allocation4], 16  }
 0x3fb   :  { %229 = vsyncadd [#allocation4], 4294967280 }
 0x3fc   :  { %167 = vsyncpa [#allocation3], 1 }
 0x3fd   :  { %168 = vsyncpa [#allocation4], 1 }

</bundles_post_ra>
